<compile_context>
chip_gen: v6e
topology: v6e:2x2x1
jax: 0.10.0
libtpu: 0.0.40
codegen_flags: <defaults>
</compile_context>

<pallas_src>
import functools
import numpy as np
import jax
import jax.numpy as jnp
from jax.experimental import pallas as pl
from jax.experimental.pallas import tpu as pltpu


# ----------------------------- parameter construction (glue, plain numpy) -----

def _hz_to_mel(f):  # HTK scale (torchaudio default mel_scale="htk")
    return 2595.0 * np.log10(1.0 + np.asarray(f, dtype=np.float64) / 700.0)


def _mel_to_hz(m):
    return 700.0 * (10.0 ** (np.asarray(m, dtype=np.float64) / 2595.0) - 1.0)


def melscale_fbanks(n_freqs, f_min, f_max, n_mels, sample_rate):
    """Matches torchaudio.functional.melscale_fbanks(norm=None, mel_scale='htk')."""
    all_freqs = np.linspace(0.0, sample_rate // 2, n_freqs)
    m_pts = np.linspace(_hz_to_mel(f_min), _hz_to_mel(f_max), n_mels + 2)
    f_pts = _mel_to_hz(m_pts)
    f_diff = f_pts[1:] - f_pts[:-1]                       # (n_mels+1,)
    slopes = f_pts[None, :] - all_freqs[:, None]          # (n_freqs, n_mels+2)
    down = -slopes[:, :-2] / f_diff[:-1]
    up = slopes[:, 2:] / f_diff[1:]
    fb = np.maximum(0.0, np.minimum(down, up))
    return fb                                             # float64 (n_freqs, n_mels)


def _round_up(x, m):
    return ((x + m - 1) // m) * m


# ----------------------------- Pallas kernel ----------------------------------

def _mel_stft_kernel(frames_ref, w_ref, fb2_ref, out_ref, *, is_db):
    # frames_ref : (TM, n_fft)        bf16 windowless frames
    # w_ref      : (n_fft, F2_pad)    bf16 fused [win*cos | win*-sin] basis
    # fb2_ref    : (F2_pad, n_mels)   f32  stacked mel filterbank [fb; fb; 0]
    # out_ref    : (TM, n_mels)       f32
    spec = jnp.dot(frames_ref[...], w_ref[...],
                   preferred_element_type=jnp.float32)     # [re | im | 0]
    power = spec * spec
    mel = jnp.dot(power, fb2_ref[...], preferred_element_type=jnp.float32)
    if is_db:
        # AmplitudeToDB(stype='power', top_db=None): 10*log10(clamp(x, 1e-10))
        mel = 10.0 * jnp.log10(jnp.maximum(mel, 1e-10))
    out_ref[...] = mel


# ----------------------------- module wrapper ----------------------------------

class MelSTFT:
    def __init__(self, sample_rate=24000, n_fft=2048, hop_length=240,
                 n_mels=128, is_db=False, frame_tile=256):
        self.sample_rate = sample_rate
        self.n_fft = n_fft
        self.hop_length = hop_length
        self.n_mels = n_mels
        self.is_db = is_db
        self.frame_tile = frame_tile

        n_freq = n_fft // 2 + 1                       # onesided STFT bins
        self.n_freq = n_freq
        f2 = 2 * n_freq
        f2_pad = max(128, _round_up(f2, 128))         # lane-aligned fused freq axis
        self.f2_pad = f2_pad

        # Periodic Hann window, fused windowed DFT basis W = [win*cos | win*-sin].
        n = np.arange(n_fft, dtype=np.float64)
        window = 0.5 * (1.0 - np.cos(2.0 * np.pi * n / n_fft))
        freqs = np.arange(n_freq, dtype=np.float64)
        ang = 2.0 * np.pi * np.outer(n, freqs) / n_fft          # (n_fft, n_freq)
        w = np.zeros((n_fft, f2_pad), np.float32)
        w[:, :n_freq] = np.cos(ang) * window[:, None]
        w[:, n_freq:f2] = -np.sin(ang) * window[:, None]

        fb = melscale_fbanks(n_freq, 0.0, sample_rate / 2.0, n_mels, sample_rate)
        fb2 = np.zeros((f2_pad, n_mels), np.float32)
        fb2[:n_freq, :] = fb
        fb2[n_freq:f2, :] = fb

        self.w = jnp.asarray(w, dtype=jnp.bfloat16)     # (n_fft, F2_pad) bf16
        self.fb2 = jnp.asarray(fb2, dtype=jnp.float32)  # (F2_pad, n_mels) f32

        # Explicit scoped-VMEM budget: worst-case double buffering of everything,
        # capped below v7x's 64 MiB physical VMEM.
        const_bytes = n_fft * f2_pad * 2 + f2_pad * n_mels * 4
        tile_bytes = frame_tile * n_fft * 2 + frame_tile * n_mels * 4
        temp_bytes = 3 * frame_tile * f2_pad * 4
        est = const_bytes + 2 * tile_bytes + temp_bytes
        self.vmem_limit_bytes = int(min(60 << 20, max(32 << 20, 2 * est)))

        self._jit_forward = jax.jit(self._forward)

    def _forward(self, waveform):
        B, T = waveform.shape
        n_fft, hop = self.n_fft, self.hop_length
        tm = self.frame_tile

        # STFT center padding (pad_mode="reflect") on the bf16 waveform.
        pad = n_fft // 2
        x = jnp.pad(waveform.astype(jnp.bfloat16), ((0, 0), (pad, pad)),
                    mode="reflect")
        tp = T + 2 * pad
        n_frames = 1 + T // hop
        total = B * n_frames
        total_pad = _round_up(total, tm)

        # One fused strided gather (no separate jnp.pad of the frames array):
        # padded tail rows re-read frame 0 of batch 0 and are sliced off below.
        rows = np.arange(total_pad)
        b_idx = np.where(rows < total, rows // n_frames, 0)
        f_idx = np.where(rows < total, rows % n_frames, 0)
        starts = jnp.asarray(b_idx * tp + f_idx * hop, dtype=jnp.int32)
        xf = x.reshape(-1)
        frames = jax.vmap(
            lambda s: jax.lax.dynamic_slice(xf, (s,), (n_fft,)))(starts)
        # frames: (total_pad, n_fft) bf16

        kernel = functools.partial(_mel_stft_kernel, is_db=self.is_db)
        out = pl.pallas_call(
            kernel,
            out_shape=jax.ShapeDtypeStruct((total_pad, self.n_mels), jnp.float32),
            grid=(total_pad // tm,),
            in_specs=[
                pl.BlockSpec((tm, n_fft), lambda i: (i, 0)),
                # Constant operands: never re-fetched -> single-buffered.
                pl.BlockSpec((n_fft, self.f2_pad), lambda i: (0, 0),
                             pipeline_mode=pl.Buffered(1)),
                pl.BlockSpec((self.f2_pad, self.n_mels), lambda i: (0, 0),
                             pipeline_mode=pl.Buffered(1)),
            ],
            out_specs=pl.BlockSpec((tm, self.n_mels), lambda i: (i, 0)),
            compiler_params=pltpu.CompilerParams(
                dimension_semantics=("parallel",),
                vmem_limit_bytes=self.vmem_limit_bytes),
        )(frames, self.w, self.fb2)

        out = out[:total].reshape(B, n_frames, self.n_mels)
        # Match torchaudio output layout: (..., n_mels, n_frames)
        return jnp.transpose(out, (0, 2, 1))

    def __call__(self, waveform):
        return self._jit_forward(waveform)


# ----------------------------- reference (pure numpy, independent) -------------

def _reference(waveform, mod: MelSTFT):
    wf = np.asarray(waveform, dtype=np.float64)
    B, T = wf.shape
    n_fft, hop = mod.n_fft, mod.hop_length
    pad = n_fft // 2
    x = np.pad(wf, ((0, 0), (pad, pad)), mode="reflect")
    n_frames = 1 + T // hop
    idx = np.arange(n_frames)[:, None] * hop + np.arange(n_fft)[None, :]
    frames = x[:, idx]                                       # (B, n_frames, n_fft)
    n = np.arange(n_fft, dtype=np.float64)
    window = 0.5 * (1.0 - np.cos(2.0 * np.pi * n / n_fft))   # periodic Hann
    spec = np.fft.rfft(frames * window[None, None, :], n=n_fft, axis=-1)
    power = np.abs(spec) ** 2                                # power=2.0
    fb = melscale_fbanks(n_fft // 2 + 1, 0.0, mod.sample_rate / 2.0,
                         mod.n_mels, mod.sample_rate)
    mel = power @ fb                                         # (B, n_frames, n_mels)
    if mod.is_db:
        mel = 10.0 * np.log10(np.maximum(mel, 1e-10))
    return np.transpose(mel, (0, 2, 1))                      # (B, n_mels, n_frames)


# ----------------------------- main --------------------------------------------

if __name__ == "__main__":
    # Small but consistent configuration of the module.
    B, T = 2, 1024
    mod = MelSTFT(sample_rate=8000, n_fft=256, hop_length=64, n_mels=128,
                  is_db=False)

    key = jax.random.PRNGKey(0)
    waveform = jax.random.normal(key, (B, T), dtype=jnp.float32)

    out = mod(waveform)
    out = jax.block_until_ready(out)

    ref = _reference(waveform, mod)
    assert out.shape == ref.shape, (out.shape, ref.shape)
    err = float(np.max(np.abs(np.asarray(out, dtype=np.float64) - ref)) /
                (np.max(np.abs(ref)) + 1e-12))
    # Loose tolerance: frames/bases are bf16 (same effective precision as the
    # TPU MXU default single bf16 pass on f32 inputs).
    assert err < 5e-2, f"relative max error too large: {err}"

    print("KERNEL_OK")
</pallas_src>

<mosaic_0001>
module attributes {stable_mosaic.version = 11 : i64} {
  func.func @_mel_stft_kernel(%arg0: i32, %arg1: memref<256x256xbf16, #tpu.memory_space<vmem>>, %arg2: memref<256x384xbf16, #tpu.memory_space<vmem>>, %arg3: memref<384x128xf32, #tpu.memory_space<vmem>>, %arg4: memref<256x128xf32, #tpu.memory_space<vmem>>) attributes {dimension_semantics = [#tpu.dimension_semantics<parallel>], iteration_bounds = array<i64: 1>, scalar_prefetch = 0 : i64, scratch_operands = 0 : i64, tpu.core_type = #tpu.core_type<tc>, window_params = [{transform_indices = @transform_0, window_bounds = array<i64: 256, 256>}, {pipeline_mode = #tpu.pipeline_mode<synchronous>, transform_indices = @transform_1, window_bounds = array<i64: 256, 384>}, {pipeline_mode = #tpu.pipeline_mode<synchronous>, transform_indices = @transform_2, window_bounds = array<i64: 384, 128>}, {transform_indices = @transform_3, window_bounds = array<i64: 256, 128>}]} {
    %c0 = arith.constant 0 : index
    %c0_0 = arith.constant 0 : index
    %0 = vector.load %arg1[%c0, %c0_0] : memref<256x256xbf16, #tpu.memory_space<vmem>>, vector<256x256xbf16>
    %c0_1 = arith.constant 0 : index
    %c0_2 = arith.constant 0 : index
    %1 = vector.load %arg2[%c0_1, %c0_2] : memref<256x384xbf16, #tpu.memory_space<vmem>>, vector<256x384xbf16>
    %cst = arith.constant dense<0.000000e+00> : vector<256x384xf32>
    %2 = tpu.matmul %0, %1, %cst {dimension_numbers = #tpu.dot_dimension_numbers<[1], [0], [0], [1], [0, 0, 1, 1], [], []>} : vector<256x256xbf16>, vector<256x384xbf16>, vector<256x384xf32> -> vector<256x384xf32>
    %3 = arith.mulf %2, %2 : vector<256x384xf32>
    %c0_3 = arith.constant 0 : index
    %c0_4 = arith.constant 0 : index
    %4 = vector.load %arg3[%c0_3, %c0_4] : memref<384x128xf32, #tpu.memory_space<vmem>>, vector<384x128xf32>
    %cst_5 = arith.constant dense<0.000000e+00> : vector<256x128xf32>
    %5 = tpu.matmul %3, %4, %cst_5 {dimension_numbers = #tpu.dot_dimension_numbers<[1], [0], [0], [1], [0, 0, 1, 1], [], []>} : vector<256x384xf32>, vector<384x128xf32>, vector<256x128xf32> -> vector<256x128xf32>
    %c0_6 = arith.constant 0 : index
    %c0_7 = arith.constant 0 : index
    %6 = vector.load %arg4[%c0_6, %c0_7] : memref<256x128xf32, #tpu.memory_space<vmem>>, vector<256x128xf32>
    tpu.vector_store %arg4[%c0_6, %c0_7], %5 {strides = array<i32>} : memref<256x128xf32, #tpu.memory_space<vmem>>, vector<256x128xf32>,
    return
  }
  func.func @transform_0(%arg0: i32) -> (i32, i32) {
    %c0_i32 = arith.constant 0 : i32
    %c0_i32_0 = arith.constant 0 : i32
    return %arg0, %c0_i32 : i32, i32
  }
  func.func @transform_1(%arg0: i32) -> (i32, i32) {
    %c0_i32 = arith.constant 0 : i32
    %c0_i32_0 = arith.constant 0 : i32
    %c0_i32_1 = arith.constant 0 : i32
    return %c0_i32, %c0_i32_0 : i32, i32
  }
  func.func @transform_2(%arg0: i32) -> (i32, i32) {
    %c0_i32 = arith.constant 0 : i32
    %c0_i32_0 = arith.constant 0 : i32
    %c0_i32_1 = arith.constant 0 : i32
    return %c0_i32, %c0_i32_0 : i32, i32
  }
  func.func @transform_3(%arg0: i32) -> (i32, i32) {
    %c0_i32 = arith.constant 0 : i32
    %c0_i32_0 = arith.constant 0 : i32
    return %arg0, %c0_i32 : i32, i32
  }
}

</mosaic_0001>

<bundles_post_ra>
// kernel: custom-call
= control target key start
LH: loop header
LB: loop body
LE: loop exit
PB: predicated region body
PF: predicated region fallthrough
CT: control target
= control target key end

     0   :  { %s6_s0 = inlined_call_operand.vmem [shape: bf16[256,256], index: 0, kind: output, shape index: {}]  }

// kernel: _forward.1
= control target key start
LH: loop header
LB: loop body
LE: loop exit
PB: predicated region body
PF: predicated region fallthrough
CT: control target
= control target key end

     0   :  { %8 = vsyncpa [#allocation3], 0  ;;  %s2345_s0 = inlined_call_operand.vmem [shape: bf16[256,256], index: 0, kind: input, shape index: {}]   ;;  %s2346_s1 = inlined_call_operand.hbm [shape: bf16[256,384], index: 1, kind: input, shape index: {}]   ;;  %s2347_s2 = inlined_call_operand.hbm [shape: f32[384,128], index: 2, kind: input, shape index: {}]   ;;  %s2348_s3 = inlined_call_operand.vmem [shape: f32[256,128], index: 3, kind: output, shape index: {}]  }
   0x1   :  { %9 = vsyncpa [#allocation5], 0  ;;  %s2024_s12 = smov [#allocation2]  }
   0x2   :  { %s17_s13 = sshll.u32 %s2024_s12, 4  ;;  %s18_s13 = int_to_ptr.vmem [resolvable:$true] %s17_s13 }
   0x3   :  { %s1988_s14 = scalar_lea.vmem %s18_s13, 6144  ;;  %p1993_p1 = scmp.lt.s32.totalorder %s18_s13, %s18_s13 }
   0x4   :  { %p1989_p0 = scmp.ne.s32.totalorder %s18_s13, %s1988_s14  ;;  %p1994_p2 = scmp.lt.s32.totalorder %s1988_s14, %s1988_s14 }
   0x6   :  { %p1995_p3 = por %p1994_p2, %p1993_p1 }
   0x8   :  { %p1996_p4 = pnand %p1995_p3, %p1989_p0 }
   0xa   :  { %1999 = shalt.err (!%p1996_p4)
}
   0xb   :  { %s2025_s15 = smov 192   ;;  %s2026_s16 = smov 12  }
   0xc   :  { %23 = dma.hbm_to_vmem [thread:$0]  %s2346_s1, 6144, %s18_s13, [#allocation3], %s2025_s15, %s2025_s15, %s2026_s16  }
   0xd   :  { %s2027_s19 = smov [#allocation4]  }
   0xe   :  { %s29_s20 = sshll.u32 %s2027_s19, 4  ;;  %s30_s20 = int_to_ptr.vmem [resolvable:$true] %s29_s20 }
   0xf   :  { %s2008_s21 = scalar_lea.vmem %s30_s20, 6144  ;;  %p2013_p6 = scmp.lt.s32.totalorder %s30_s20, %s30_s20 }
  0x10   :  { %p2009_p5 = scmp.ne.s32.totalorder %s30_s20, %s2008_s21  ;;  %p2014_p7 = scmp.lt.s32.totalorder %s2008_s21, %s2008_s21 }
  0x12   :  { %p2015_p8 = por %p2014_p7, %p2013_p6 }
  0x14   :  { %p2016_p9 = pnand %p2015_p8, %p2009_p5 }
  0x16   :  { %2019 = shalt.err (!%p2016_p9)
}
  0x17   :  { %s2028_s22 = smov 128   ;;  %s2029_s23 = smov 8  }
  0x18   :  { %35 = dma.hbm_to_vmem [thread:$0]  %s2347_s2, 6144, %s30_s20, [#allocation5], %s2028_s22, %s2028_s22, %s2029_s23  }
  0x19   :  { %2020 = dma.done.wait [#allocation3], 6144  }
  0x1a   :  { %2021 = vsyncadd [#allocation3], 4294961152 }
  0x1b   :  { %2022 = dma.done.wait [#allocation5], 6144  }
  0x1c   :  { %2023 = vsyncadd [#allocation5], 4294961152  ;;  %v1868_v0 = vld [vmem:[#allocation2 + $0xac] ss:$12 sps:$4 sm:$0xff]   ;;  %v1870_v1 = vld [vmem:[#allocation2 + $0xa8] ss:$12 sps:$4 sm:$0xff]  }
  0x1d   :  { %555 = vmatprep.subr.bf16.mxu0 %v1868_v0  ;;  %v1871_v2 = vld [vmem:[#allocation2 + $0x94] ss:$12 sps:$4 sm:$0xff]   ;;  %v1873_v3 = vld [vmem:[#allocation2 + $0x90] ss:$12 sps:$4 sm:$0xff]   ;;  %v1876_v5 = vld [vmem:[#allocation2 + $0x78] ss:$12 sps:$4 sm:$0xff]  }
  0x1e   :  { %556 = vmatpush1.bf16.msra.mxu0 %v1870_v1  ;;  %v1874_v4 = vld [vmem:[#allocation2 + $0x7c] ss:$12 sps:$4 sm:$0xff]   ;;  %v1877_v6 = vld [vmem:[#allocation2 + $0x64] ss:$12 sps:$4 sm:$0xff]   ;;  %v1879_v9 = vld [vmem:[#allocation2 + $0x60] ss:$12 sps:$4 sm:$0xff]  }
  0x1f   :  { %557 = vmatprep.subr.bf16.mxu0 %v1871_v2  ;;  %v1886_v7 = vld [vmem:[#allocation2 + $0x170] ss:$12 sps:$4 sm:$0xff]   ;;  %v1880_v10 = vld [vmem:[#allocation2 + $0x4c] ss:$12 sps:$4 sm:$0xff]   ;;  %v1882_v13 = vld [vmem:[#allocation2 + $0x48] ss:$12 sps:$4 sm:$0xff]  }
  0x20   :  { %v1887_v8 = vld [vmem:[#allocation2 + $0xb0] ss:$12 sps:$4 sm:$0xff]   ;;  %1621 = vmatprep.subr.bf16.mxu1 %v1886_v7  ;;  %v1891_v11 = vld [vmem:[#allocation2 + $0x158] ss:$12 sps:$4 sm:$0xff]   ;;  %v1883_v14 = vld [vmem:[#allocation2 + $0x34] ss:$12 sps:$4 sm:$0xff]  }
  0x21   :  { %1622 = vmatpush3.bf16.msra.mxu1 %v1887_v8  ;;  %v1892_v12 = vld [vmem:[#allocation2 + $0x98] ss:$12 sps:$4 sm:$0xff]   ;;  %v1896_v15 = vld [vmem:[#allocation2 + $0x140] ss:$12 sps:$4 sm:$0xff]   ;;  %v1885_v17 = vld [vmem:[#allocation2 + $0x30] ss:$12 sps:$4 sm:$0xff]  }
  0x22   :  { %558 = vmatpush1.bf16.msra.mxu0 %v1873_v3  ;;  %1623 = vmatprep.subr.bf16.mxu1 %v1891_v11  ;;  %v1897_v16 = vld [vmem:[#allocation2 + $0x80] ss:$12 sps:$4 sm:$0xff]   ;;  %v1901_v18 = vld [vmem:[#allocation2 + $0x128] ss:$12 sps:$4 sm:$0xff]   ;;  %v1890_v21 = vld [vmem:[#allocation2 + $0x18] ss:$12 sps:$4 sm:$0xff]  }
  0x23   :  { %559 = vmatprep.subr.bf16.mxu0 %v1874_v4  ;;  %v1902_v19 = vld [vmem:[#allocation2 + $0x68] ss:$12 sps:$4 sm:$0xff]   ;;  %v1906_v22 = vld [vmem:[#allocation2 + $0x110] ss:$12 sps:$4 sm:$0xff]   ;;  %v1911_v25 = vld [vmem:[#allocation2 + $0xf8] ss:$12 sps:$4 sm:$0xff]  }
  0x24   :  { %v1888_v20 = vld [vmem:[#allocation2 + $0x1c] ss:$12 sps:$4 sm:$0xff]   ;;  %v1893_v24 = vld [vmem:[#allocation2 + $0x4] ss:$12 sps:$4 sm:$0xff]   ;;  %v1895_v26 = vld [vmem:[#allocation2] ss:$12 sps:$4 sm:$0xff]  }
  0x25   :  { %1624 = vmatpush3.bf16.msra.mxu1 %v1892_v12  ;;  %v1907_v23 = vld [vmem:[#allocation2 + $0x50] ss:$12 sps:$4 sm:$0xff]   ;;  %v1898_v27 = vld [vmem:[#allocation2 + $0x16c] ss:$12 sps:$4 sm:$0xff]   ;;  %v1900_v30 = vld [vmem:[#allocation2 + $0x168] ss:$12 sps:$4 sm:$0xff]  }
  0x26   :  { %560 = vmatpush1.bf16.msra.mxu0 %v1876_v5  ;;  %1625 = vmatprep.subr.bf16.mxu1 %v1896_v15  ;;  %v1912_v28 = vld [vmem:[#allocation2 + $0x38] ss:$12 sps:$4 sm:$0xff]   ;;  %v1916_v29 = vld [vmem:[#allocation2 + $0xe0] ss:$12 sps:$4 sm:$0xff]   ;;  %v1921_v33 = vld [vmem:[#allocation2 + $0xc8] ss:$12 sps:$4 sm:$0xff]  }
  0x27   :  { %561 = vmatprep.subr.bf16.mxu0 %v1877_v6  ;;  %v1903_v31 = vld [vmem:[#allocation2 + $0x154] ss:$12 sps:$4 sm:$0xff]   ;;  %v1905_v34 = vld [vmem:[#allocation2 + $0x150] ss:$12 sps:$4 sm:$0xff]   ;;  %v1910_v39 = vld [vmem:[#allocation2 + $0x138] ss:$12 sps:$4 sm:$0xff]  }
  0x28   :  { %v1917_v32 = vld [vmem:[#allocation2 + $0x20] ss:$12 sps:$4 sm:$0xff]   ;;  %v1922_v35 = vld [vmem:[#allocation2 + $0x8] ss:$12 sps:$4 sm:$0xff]   ;;  %v1925_v38 = vld [vmem:[%s2345_s0] ss:$8 sps:$4 sm:$0xff]  }
  0x29   :  { %1626 = vmatpush3.bf16.msra.mxu1 %v1897_v16  ;;  %v1927_v36 = vld [vmem:[%s2345_s0 + $0x4] ss:$8 sps:$4 sm:$0xff]   ;;  %v1934_v40 = vld [vmem:[%s2345_s0 + $0x14] ss:$8 sps:$4 sm:$0xff]   ;;  %v2030_v42 = vmov 0.0  }
  0x2a   :  { %562 = vmatpush1.bf16.msra.mxu0 %v1879_v9  ;;  %1627 = vmatprep.subr.bf16.mxu1 %v1901_v18  ;;  %v1908_v37 = vld [vmem:[#allocation2 + $0x13c] ss:$12 sps:$4 sm:$0xff]   ;;  %v1913_v41 = vld [vmem:[#allocation2 + $0x124] ss:$12 sps:$4 sm:$0xff]   ;;  %v1915_v43 = vld [vmem:[#allocation2 + $0x120] ss:$12 sps:$4 sm:$0xff]  }
  0x2b   :  { %563 = vmatprep.subr.bf16.mxu0 %v1880_v10  ;;  %780 = vmatprep.mubr.bf16.mxu1 %v1927_v36  ;;  %v1918_v44 = vld [vmem:[#allocation2 + $0x10c] ss:$12 sps:$4 sm:$0xff]   ;;  %v2070_v45 = vld [vmem:[%s2345_s0 + $0x10] ss:$8 sps:$4 sm:$0xff]   ;;  %v2075_v47 = vld [vmem:[%s2345_s0 + $0x24] ss:$8 sps:$4 sm:$0xff]  }
  0x2c   :  { %587 = vmatprep.mubr.bf16.mxu0 %v1927_v36  ;;  %v1920_v46 = vld [vmem:[#allocation2 + $0x108] ss:$12 sps:$4 sm:$0xff]   ;;  %v1928_v49 = vld [vmem:[#allocation2 + $0xf0] ss:$12 sps:$4 sm:$0xff]   ;;  %v1931_v55 = vld [vmem:[#allocation2 + $0xd8] ss:$12 sps:$4 sm:$0xff]  }
  0x2d   :  { %1628 = vmatpush3.bf16.msra.mxu1 %v1902_v19  ;;  %v1923_v48 = vld [vmem:[#allocation2 + $0xf4] ss:$12 sps:$4 sm:$0xff]   ;;  %v1929_v50 = vld [vmem:[#allocation2 + $0xdc] ss:$12 sps:$4 sm:$0xff]   ;;  %v2082_v53 = vld [vmem:[%s2345_s0 + $0x20] ss:$8 sps:$4 sm:$0xff]  }
  0x2e   :  { %564 = vmatpush1.bf16.msra.mxu0 %v1882_v13  ;;  %1629 = vmatprep.subr.bf16.mxu1 %v1906_v22  ;;  %v1020_v51 = vld [vmem:[#allocation4 + $0x78] sm:$0xff]  ;;  %v1019_v52 = vld [vmem:[#allocation4 + $0x70] sm:$0xff]  ;;  %v1018_v54 = vld [vmem:[#allocation4 + $0x68] sm:$0xff] }
  0x2f   :  { %565 = vmatprep.subr.bf16.mxu0 %v1883_v14  ;;  %v2088_v56 = vld [vmem:[%s2345_s0 + $0x34] ss:$8 sps:$4 sm:$0xff]   ;;  %v1016_v60 = vld [vmem:[#allocation4 + $0x58] sm:$0xff]  ;;  %v1015_v61 = vld [vmem:[#allocation4 + $0x50] sm:$0xff] }
  0x30   :  { %v1932_v57 = vld [vmem:[#allocation2 + $0xc4] ss:$12 sps:$4 sm:$0xff]   ;;  %v1936_v59 = vld [vmem:[#allocation2 + $0xc0] ss:$12 sps:$4 sm:$0xff]   ;;  %v2103_v63 = vld [vmem:[%s2345_s0 + $0x44] ss:$8 sps:$4 sm:$0xff]  }
  0x31   :  { %1630 = vmatpush3.bf16.msra.mxu1 %v1907_v23  ;;  %v1017_v58 = vld [vmem:[#allocation4 + $0x60] sm:$0xff]  ;;  %v1052_v0 = vld [vmem:[#allocation4 + $0x178] sm:$0xff]  ;;  %v1014_v1 = vld [vmem:[#allocation4 + $0x48] sm:$0xff] }
  0x32   :  { %566 = vmatpush1.bf16.msra.mxu0 %v1885_v17  ;;  %1631 = vmatprep.subr.bf16.mxu1 %v1911_v25  ;;  %v2098_v62 = vld [vmem:[%s2345_s0 + $0x30] ss:$8 sps:$4 sm:$0xff]   ;;  %v1051_v2 = vld [vmem:[#allocation4 + $0x170] sm:$0xff]  ;;  %v1012_v5 = vld [vmem:[#allocation4 + $0x38] sm:$0xff] }
  0x33   :  { %567 = vmatprep.subr.bf16.mxu0 %v1888_v20  ;;  %v1013_v3 = vld [vmem:[#allocation4 + $0x40] sm:$0xff]  ;;  %v1050_v4 = vld [vmem:[#allocation4 + $0x168] sm:$0xff]  ;;  %v2113_v6 = vld [vmem:[%s2345_s0 + $0x40] ss:$8 sps:$4 sm:$0xff]  }
  0x34   :  { %v1049_v7 = vld [vmem:[#allocation4 + $0x160] sm:$0xff]  ;;  %v1011_v9 = vld [vmem:[#allocation4 + $0x30] sm:$0xff]  ;;  %v1048_v10 = vld [vmem:[#allocation4 + $0x158] sm:$0xff] }
  0x35   :  { %1632 = vmatpush3.bf16.msra.mxu1 %v1912_v28  ;;  %v2118_v8 = vld [vmem:[%s2345_s0 + $0x54] ss:$8 sps:$4 sm:$0xff]   ;;  %v1047_v12 = vld [vmem:[#allocation4 + $0x150] sm:$0xff]  ;;  %v2130_v14 = vld [vmem:[%s2345_s0 + $0x50] ss:$8 sps:$4 sm:$0xff]  }
  0x36   :  { %568 = vmatpush1.bf16.msra.mxu0 %v1890_v21  ;;  %1633 = vmatprep.subr.bf16.mxu1 %v1916_v29  ;;  %v1010_v11 = vld [vmem:[#allocation4 + $0x28] sm:$0xff]  ;;  %v1009_v13 = vld [vmem:[#allocation4 + $0x20] sm:$0xff]  ;;  %v2135_v16 = vld [vmem:[%s2345_s0 + $0x64] ss:$8 sps:$4 sm:$0xff]  }
  0x37   :  { %569 = vmatprep.subr.bf16.mxu0 %v1893_v24  ;;  %v1046_v15 = vld [vmem:[#allocation4 + $0x148] sm:$0xff]  ;;  %v1008_v17 = vld [vmem:[#allocation4 + $0x18] sm:$0xff]  ;;  %v1045_v18 = vld [vmem:[#allocation4 + $0x140] sm:$0xff] }
  0x38   :  { %v1007_v19 = vld [vmem:[#allocation4 + $0x10] sm:$0xff]  ;;  %v1044_v20 = vld [vmem:[#allocation4 + $0x138] sm:$0xff]  ;;  %v1006_v21 = vld [vmem:[#allocation4 + $0x8] sm:$0xff] }
  0x39   :  { %1634 = vmatpush3.bf16.msra.mxu1 %v1917_v32  ;;  %v2147_v22 = vld [vmem:[%s2345_s0 + $0x60] ss:$8 sps:$4 sm:$0xff]   ;;  %v2152_v24 = vld [vmem:[%s2345_s0 + $0x74] ss:$8 sps:$4 sm:$0xff]   ;;  %v2164_v29 = vld [vmem:[%s2345_s0 + $0x70] ss:$8 sps:$4 sm:$0xff]  }
  0x3a   :  { %570 = vmatpush1.bf16.msra.mxu0 %v1895_v26  ;;  %1635 = vmatprep.subr.bf16.mxu1 %v1921_v33  ;;  %v1043_v23 = vld [vmem:[#allocation4 + $0x130] sm:$0xff]  ;;  %v1005_v25 = vld [vmem:[#allocation4] sm:$0xff]  ;;  %v1042_v26 = vld [vmem:[#allocation4 + $0x128] sm:$0xff] }
  0x3b   :  { %571 = vmatprep.subr.bf16.mxu0 %v1898_v27  ;;  %v1036_v27 = vld [vmem:[#allocation4 + $0xf8] sm:$0xff]  ;;  %v1035_v28 = vld [vmem:[#allocation4 + $0xf0] sm:$0xff]  ;;  %v1033_v32 = vld [vmem:[#allocation4 + $0xe0] sm:$0xff] }
  0x3c   :  { %v1032_v33 = vld [vmem:[#allocation4 + $0xd8] sm:$0xff]  ;;  %v1031_v36 = vld [vmem:[#allocation4 + $0xd0] sm:$0xff] }
  0x3d   :  { %1636 = vmatpush3.bf16.msra.mxu1 %v1922_v35  ;;  %v2186_v35 = vld [vmem:[%s2345_s0 + $0x94] ss:$8 sps:$4 sm:$0xff]  }
  0x3e   :  { %572 = vmatpush2.bf16.msra.mxu0 %v1900_v30  ;;  %1053 = vmatprep.subr.mxu1 %v2030_v42  ;;  %v2169_v30 = vld [vmem:[%s2345_s0 + $0x84] ss:$8 sps:$4 sm:$0xff]  }
  0x3f   :  { %573 = vmatprep.subr.bf16.mxu0 %v1903_v31  ;;  %v1034_v31 = vld [vmem:[#allocation4 + $0xe8] sm:$0xff] }
  0x40   :  { %781 = vmatmul.mubr.bf16.vlgmr.msra.gmra.mxu1 %v1925_v38 }
  0x41   :  { %788 = vmatprep.mubr.bf16.mxu1 %v1934_v40  ;;  %1054 = vmatpush1.msra.mxu1 %v1020_v51  ;;  %v1965_v51 = vld [vmem:[%s2345_s0 + $0xb4] ss:$8 sps:$4 sm:$0xff]  }
  0x42   :  { %574 = vmatpush2.bf16.msra.mxu0 %v1905_v34  ;;  %1055 = vmatprep.subr.mxu1 %v2030_v42  ;;  %v2181_v34 = vld [vmem:[%s2345_s0 + $0x80] ss:$8 sps:$4 sm:$0xff]  }
  0x43   :  { %575 = vmatprep.subr.bf16.mxu0 %v1908_v37  ;;  %1056 = vmatpush1.msra.mxu1 %v1019_v52  ;;  %v1041_v37 = vld [vmem:[#allocation4 + $0x120] sm:$0xff] }
  0x44   :  { %1057 = vmatprep.subr.mxu1 %v2030_v42  ;;  %v1025_v52 = vld [vmem:[#allocation4 + $0xa0] sm:$0xff] }
  0x45   :  { %1058 = vmatpush1.msra.mxu1 %v1018_v54  ;;  %v1023_v54 = vld [vmem:[#allocation4 + $0x90] sm:$0xff] }
  0x46   :  { %576 = vmatpush2.bf16.msra.mxu0 %v1910_v39  ;;  %1059 = vmatprep.subr.mxu1 %v2030_v42  ;;  %v1029_v39 = vld [vmem:[#allocation4 + $0xc0] sm:$0xff] }
  0x47   :  { %577 = vmatprep.subr.bf16.mxu0 %v1913_v41  ;;  %1060 = vmatpush1.msra.mxu1 %v1017_v58  ;;  %v1962_v41 = vld [vmem:[%s2345_s0 + $0xa4] ss:$8 sps:$4 sm:$0xff]   ;;  %v1021_v58 = vld [vmem:[#allocation4 + $0x80] sm:$0xff] }
  0x48   :  { %789 = vmatmul.mubr.bf16.gmra.mxu1 %v2070_v45  ;;  %1061 = vmatprep.subr.mxu1 %v2030_v42 }
  0x49   :  { %796 = vmatprep.mubr.bf16.mxu1 %v2075_v47  ;;  %1062 = vmatpush1.msra.mxu1 %v1016_v60  ;;  %v1971_v60 = vld [vmem:[%s2345_s0 + $0xd4] ss:$8 sps:$4 sm:$0xff]  }
  0x4a   :  { %578 = vmatpush2.bf16.msra.mxu0 %v1915_v43  ;;  %1063 = vmatprep.subr.mxu1 %v2030_v42  ;;  %v1040_v43 = vld [vmem:[#allocation4 + $0x118] sm:$0xff] }
  0x4b   :  { %579 = vmatprep.subr.bf16.mxu0 %v1918_v44  ;;  %1064 = vmatpush1.msra.mxu1 %v1015_v61  ;;  %v1028_v44 = vld [vmem:[#allocation4 + $0xb8] sm:$0xff]  ;;  %v1973_v61 = vld [vmem:[%s2345_s0 + $0xd0] ss:$8 sps:$4 sm:$0xff]  }
  0x4c   :  { %1065 = vmatprep.subr.mxu1 %v2030_v42 }
  0x4d   :  { %1066 = vmatpush1.msra.mxu1 %v1014_v1 }
  0x4e   :  { %580 = vmatpush2.bf16.msra.mxu0 %v1920_v46  ;;  %1067 = vmatprep.subr.mxu1 %v2030_v42  ;;  %v1027_v46 = vld [vmem:[#allocation4 + $0xb0] sm:$0xff] }
  0x4f   :  { %581 = vmatprep.subr.bf16.mxu0 %v1923_v48  ;;  %1068 = vmatpush1.msra.mxu1 %v1013_v3  ;;  %v1026_v48 = vld [vmem:[#allocation4 + $0xa8] sm:$0xff] }
  0x50   :  { %797 = vmatmul.mubr.bf16.gmra.mxu1 %v2082_v53  ;;  %1069 = vmatprep.subr.mxu1 %v2030_v42 }
  0x51   :  { %804 = vmatprep.mubr.bf16.mxu1 %v2088_v56  ;;  %1070 = vmatpush1.msra.mxu1 %v1012_v5 }
  0x52   :  { %582 = vmatpush2.bf16.msra.mxu0 %v1928_v49  ;;  %1071 = vmatprep.subr.mxu1 %v2030_v42  ;;  %v1037_v49 = vld [vmem:[#allocation4 + $0x100] sm:$0xff] }
  0x53   :  { %583 = vmatprep.subr.bf16.mxu0 %v1929_v50  ;;  %1072 = vmatpush1.msra.mxu1 %v1011_v9  ;;  %v1964_v50 = vld [vmem:[%s2345_s0 + $0xa0] ss:$8 sps:$4 sm:$0xff]  }
  0x54   :  { %1073 = vmatprep.subr.mxu1 %v2030_v42 }
  0x55   :  { %1074 = vmatpush1.msra.mxu1 %v1010_v11 }
  0x56   :  { %584 = vmatpush2.bf16.msra.mxu0 %v1931_v55  ;;  %1075 = vmatprep.subr.mxu1 %v2030_v42  ;;  %v1967_v55 = vld [vmem:[%s2345_s0 + $0xb0] ss:$8 sps:$4 sm:$0xff]  }
  0x57   :  { %585 = vmatprep.subr.bf16.mxu0 %v1932_v57  ;;  %1076 = vmatpush1.msra.mxu1 %v1009_v13  ;;  %v1022_v57 = vld [vmem:[#allocation4 + $0x88] sm:$0xff] }
  0x58   :  { %805 = vmatmul.mubr.bf16.gmra.mxu1 %v2098_v62  ;;  %1077 = vmatprep.subr.mxu1 %v2030_v42 }
  0x59   :  { %812 = vmatprep.mubr.bf16.mxu1 %v2103_v63  ;;  %1078 = vmatpush1.msra.mxu1 %v1008_v17 }
  0x5a   :  { %586 = vmatpush2.bf16.msra.mxu0 %v1936_v59  ;;  %1079 = vmatprep.subr.mxu1 %v2030_v42  ;;  %v1970_v59 = vld [vmem:[%s2345_s0 + $0xc0] ss:$8 sps:$4 sm:$0xff]  }
  0x5b   :  { %1781 = vmatprep.subr.mxu0 %v1052_v0  ;;  %1080 = vmatpush1.msra.mxu1 %v1007_v19 }
  0x5c   :  { %1081 = vmatprep.subr.mxu1 %v2030_v42 }
  0x5d   :  { %588 = vmatmul.mubr.bf16.vlgmr.msra.gmra.mxu0 %v1925_v38  ;;  %1082 = vmatpush1.msra.mxu1 %v1006_v21  ;;  %v1030_v38 = vld [vmem:[#allocation4 + $0xc8] sm:$0xff] }
  0x5e   :  { %597 = vmatprep.mubr.bf16.mxu0 %v1934_v40  ;;  %1782 = vmatpush3.msra.mxu0 %v1052_v0  ;;  %v1961_v40 = vld [vmem:[%s2345_s0 + $0x90] ss:$8 sps:$4 sm:$0xff]  }
  0x5f   :  { %1783 = vmatprep.subr.mxu0 %v1051_v2  ;;  %1083 = vmatprep.subr.mxu1 %v2030_v42  ;;  %v1979_v0 = vld [vmem:[%s2345_s0 + $0xf0] ss:$8 sps:$4 sm:$0xff]  }
  0x60   :  { %1784 = vmatpush3.msra.mxu0 %v1051_v2  ;;  %813 = vmatmul.mubr.bf16.gmra.mxu1 %v2113_v6 }
  0x61   :  { %1785 = vmatprep.subr.mxu0 %v1050_v4  ;;  %820 = vmatprep.mubr.bf16.mxu1 %v2118_v8 }
  0x62   :  { %1786 = vmatpush3.msra.mxu0 %v1050_v4  ;;  %1084 = vmatpush1.msra.mxu1 %v1005_v25 }
  0x63   :  { %1787 = vmatprep.subr.mxu0 %v1049_v7  ;;  %1085 = vmatprep.subr.mxu1 %v2030_v42 }
  0x64   :  { %1788 = vmatpush3.msra.mxu0 %v1049_v7  ;;  %1086 = vmatpush2.msra.mxu1 %v1036_v27 }
  0x65   :  { %598 = vmatmul.mubr.bf16.gmra.mxu0 %v2070_v45  ;;  %1789 = vmatprep.subr.mxu0 %v1048_v10  ;;  %v1039_v45 = vld [vmem:[#allocation4 + $0x110] sm:$0xff] }
  0x66   :  { %607 = vmatprep.mubr.bf16.mxu0 %v2075_v47  ;;  %1790 = vmatpush3.msra.mxu0 %v1048_v10  ;;  %v1038_v47 = vld [vmem:[#allocation4 + $0x108] sm:$0xff] }
  0x67   :  { %1791 = vmatprep.subr.mxu0 %v1047_v12  ;;  %1087 = vmatprep.subr.mxu1 %v2030_v42 }
  0x68   :  { %1792 = vmatpush3.msra.mxu0 %v1047_v12  ;;  %821 = vmatmul.mubr.bf16.gmra.mxu1 %v2130_v14 }
  0x69   :  { %1793 = vmatprep.subr.mxu0 %v1046_v15  ;;  %828 = vmatprep.mubr.bf16.mxu1 %v2135_v16 }
  0x6a   :  { %1794 = vmatpush3.msra.mxu0 %v1046_v15  ;;  %1088 = vmatpush2.msra.mxu1 %v1035_v28 }
  0x6b   :  { %1795 = vmatprep.subr.mxu0 %v1045_v18  ;;  %1089 = vmatprep.subr.mxu1 %v2030_v42 }
  0x6c   :  { %1796 = vmatpush3.msra.mxu0 %v1045_v18  ;;  %1090 = vmatpush2.msra.mxu1 %v1034_v31 }
  0x6d   :  { %608 = vmatmul.mubr.bf16.gmra.mxu0 %v2082_v53  ;;  %1797 = vmatprep.subr.mxu0 %v1044_v20  ;;  %v1024_v53 = vld [vmem:[#allocation4 + $0x98] sm:$0xff] }
  0x6e   :  { %617 = vmatprep.mubr.bf16.mxu0 %v2088_v56  ;;  %1798 = vmatpush3.msra.mxu0 %v1044_v20  ;;  %v1968_v56 = vld [vmem:[%s2345_s0 + $0xc4] ss:$8 sps:$4 sm:$0xff]  }
  0x6f   :  { %1799 = vmatprep.subr.mxu0 %v1043_v23  ;;  %1091 = vmatprep.subr.mxu1 %v2030_v42 }
  0x70   :  { %829 = vmatmul.mubr.bf16.gmra.mxu1 %v2147_v22  ;;  %1800 = vmatpush3.msra.mxu0 %v1043_v23 }
  0x71   :  { %836 = vmatprep.mubr.bf16.mxu1 %v2152_v24  ;;  %1801 = vmatprep.subr.mxu0 %v1042_v26 }
  0x72   :  { %1802 = vmatpush3.msra.mxu0 %v1042_v26  ;;  %1092 = vmatpush2.msra.mxu1 %v1033_v32 }
  0x73   :  { %1093 = vmatprep.subr.mxu1 %v2030_v42  ;;  %1803 = vmatprep.subr.mxu0 %v1041_v37 }
  0x74   :  { %1094 = vmatpush2.msra.mxu1 %v1032_v33  ;;  %1804 = vmatpush3.msra.mxu0 %v1041_v37 }
  0x75   :  { %618 = vmatmul.mubr.bf16.gmra.mxu0 %v2098_v62  ;;  %1095 = vmatprep.subr.mxu1 %v2030_v42  ;;  %v1976_v62 = vld [vmem:[%s2345_s0 + $0xe0] ss:$8 sps:$4 sm:$0xff]  }
  0x76   :  { %627 = vmatprep.mubr.bf16.mxu0 %v2103_v63  ;;  %1096 = vmatpush2.msra.mxu1 %v1031_v36  ;;  %v1977_v63 = vld [vmem:[%s2345_s0 + $0xf4] ss:$8 sps:$4 sm:$0xff]  }
  0x77   :  { %1097 = vmatprep.subr.mxu1 %v2030_v42  ;;  %1805 = vmatprep.subr.mxu0 %v1040_v43 }
  0x78   :  { %837 = vmatmul.mubr.bf16.gmra.mxu1 %v2164_v29  ;;  %1806 = vmatpush3.msra.mxu0 %v1040_v43 }
  0x79   :  { %844 = vmatprep.mubr.bf16.mxu1 %v2169_v30  ;;  %1098 = vmatpush2.msra.mxu1 %v1030_v38 }
  0x7a   :  { %1099 = vmatprep.subr.mxu1 %v2030_v42  ;;  %1807 = vmatprep.subr.mxu0 %v1039_v45 }
  0x7b   :  { %1100 = vmatpush2.msra.mxu1 %v1029_v39  ;;  %1808 = vmatpush3.msra.mxu0 %v1039_v45 }
  0x7c   :  { %1101 = vmatprep.subr.mxu1 %v2030_v42  ;;  %1809 = vmatprep.subr.mxu0 %v1038_v47 }
  0x7d   :  { %628 = vmatmul.mubr.bf16.gmra.mxu0 %v2113_v6  ;;  %1102 = vmatpush2.msra.mxu1 %v1028_v44 }
  0x7e   :  { %637 = vmatprep.mubr.bf16.mxu0 %v2118_v8  ;;  %1103 = vmatprep.subr.mxu1 %v2030_v42 }
  0x7f   :  { %1104 = vmatpush2.msra.mxu1 %v1027_v46  ;;  %1810 = vmatpush3.msra.mxu0 %v1038_v47 }
  0x80   :  { %845 = vmatmul.mubr.bf16.gmra.mxu1 %v2181_v34  ;;  %1105 = vmatprep.subr.mxu1 %v2030_v42 }
  0x81   :  { %852 = vmatprep.mubr.bf16.mxu1 %v2186_v35  ;;  %1106 = vmatpush2.msra.mxu1 %v1026_v48 }
  0x82   :  { %1811 = vmatprep.subr.mxu0 %v1037_v49  ;;  %1107 = vmatprep.subr.mxu1 %v2030_v42 }
  0x83   :  { %1812 = vmatpush3.msra.mxu0 %v1037_v49  ;;  %1108 = vmatpush2.msra.mxu1 %v1025_v52 }
  0x84   :  { %1109 = vmatprep.subr.mxu1 %v2030_v42 }
  0x85   :  { %638 = vmatmul.mubr.bf16.gmra.mxu0 %v2130_v14  ;;  %1110 = vmatpush2.msra.mxu1 %v1024_v53 }
  0x86   :  { %647 = vmatprep.mubr.bf16.mxu0 %v2135_v16  ;;  %1111 = vmatprep.subr.mxu1 %v2030_v42 }
  0x87   :  { %1112 = vmatpush2.msra.mxu1 %v1023_v54 }
  0x88   :  { %853 = vmatmul.mubr.bf16.gmra.mxu1 %v1961_v40  ;;  %1113 = vmatprep.subr.mxu1 %v2030_v42 }
  0x89   :  { %860 = vmatprep.mubr.bf16.mxu1 %v1962_v41  ;;  %1114 = vmatpush2.msra.mxu1 %v1022_v57 }
  0x8a   :  { %1115 = vmatprep.subr.mxu1 %v2030_v42  ;;  %v1974_v42 = vld [vmem:[%s2345_s0 + $0xe4] ss:$8 sps:$4 sm:$0xff]  }
  0x8b   :  { %1116 = vmatpush2.msra.mxu1 %v1021_v58 }
  0x8d   :  { %648 = vmatmul.mubr.bf16.gmra.mxu0 %v2147_v22 }
  0x8e   :  { %657 = vmatprep.mubr.bf16.mxu0 %v2152_v24 }
  0x90   :  { %861 = vmatmul.mubr.bf16.gmra.mxu1 %v1964_v50 }
  0x91   :  { %868 = vmatprep.mubr.bf16.mxu1 %v1965_v51 }
  0x95   :  { %658 = vmatmul.mubr.bf16.gmra.mxu0 %v2164_v29 }
  0x96   :  { %667 = vmatprep.mubr.bf16.mxu0 %v2169_v30 }
  0x98   :  { %869 = vmatmul.mubr.bf16.gmra.mxu1 %v1967_v55 }
  0x99   :  { %876 = vmatprep.mubr.bf16.mxu1 %v1968_v56 }
  0x9d   :  { %668 = vmatmul.mubr.bf16.gmra.mxu0 %v2181_v34 }
  0x9e   :  { %677 = vmatprep.mubr.bf16.mxu0 %v2186_v35 }
  0xa0   :  { %877 = vmatmul.mubr.bf16.gmra.mxu1 %v1970_v59 }
  0xa1   :  { %884 = vmatprep.mubr.bf16.mxu1 %v1971_v60 }
  0xa5   :  { %678 = vmatmul.mubr.bf16.gmra.mxu0 %v1961_v40 }
  0xa6   :  { %687 = vmatprep.mubr.bf16.mxu0 %v1962_v41 }
  0xa8   :  { %885 = vmatmul.mubr.bf16.gmra.mxu1 %v1973_v61 }
  0xa9   :  { %892 = vmatprep.mubr.bf16.mxu1 %v1974_v42 }
  0xad   :  { %688 = vmatmul.mubr.bf16.gmra.mxu0 %v1964_v50 }
  0xae   :  { %697 = vmatprep.mubr.bf16.mxu0 %v1965_v51 }
  0xb0   :  { %893 = vmatmul.mubr.bf16.gmra.mxu1 %v1976_v62 }
  0xb1   :  { %900 = vmatprep.mubr.bf16.mxu1 %v1977_v63 }
  0xb5   :  { %698 = vmatmul.mubr.bf16.gmra.mxu0 %v1967_v55 }
  0xb6   :  { %707 = vmatprep.mubr.bf16.mxu0 %v1968_v56 }
  0xb8   :  { %901 = vmatmul.mubr.bf16.gmra.mxu1 %v1979_v0 }
  0xbd   :  { %708 = vmatmul.mubr.bf16.gmra.mxu0 %v1970_v59 }
  0xbe   :  { %717 = vmatprep.mubr.bf16.mxu0 %v1971_v60 }
  0xc5   :  { %718 = vmatmul.mubr.bf16.gmra.mxu0 %v1973_v61 }
  0xc6   :  { %727 = vmatprep.mubr.bf16.mxu0 %v1974_v42 }
  0xcd   :  { %728 = vmatmul.mubr.bf16.gmra.mxu0 %v1976_v62 }
  0xce   :  { %737 = vmatprep.mubr.bf16.mxu0 %v1977_v63 }
  0xd5   :  { %738 = vmatmul.mubr.bf16.gmra.mxu0 %v1979_v0 }
 0x100   :  { %v1637_v1 = vpop.f32.mrf.mxu1 }
 0x102   :  { %v1638_v2 = vpop.f32.mrf.mxu1 }
 0x103   :  { %v1639_v3 = vadd.f32 %v1638_v2, %v1637_v1 }
 0x104   :  { %v1640_v4 = vpop.f32.mrf.mxu1 }
 0x105   :  { %v911_v5 = vmul.f32 %v1639_v3, %v1639_v3 }
 0x106   :  { %v1641_v6 = vpop.f32.mrf.mxu1 }
 0x107   :  { %v1642_v7 = vadd.f32 %v1641_v6, %v1640_v4  ;;  %1813 = vmatprep.mubr.f32.mxu0 %v911_v5 }
 0x108   :  { %v1643_v8 = vpop.f32.mrf.mxu1 }
 0x109   :  { %v914_v9 = vmul.f32 %v1642_v7, %v1642_v7 }
 0x10a   :  { %v1644_v10 = vpop.f32.mrf.mxu1 }
 0x10b   :  { %v1645_v11 = vadd.f32 %v1644_v10, %v1643_v8  ;;  %1814 = vmatmul.mubr.f32.vlgmr.msra.gmra.mxu0 %v914_v9 }
 0x10c   :  { %v1646_v12 = vpop.f32.mrf.mxu1 }
 0x10d   :  { %v917_v13 = vmul.f32 %v1645_v11, %v1645_v11 }
 0x10e   :  { %v1647_v14 = vpop.f32.mrf.mxu1 }
 0x10f   :  { %v1648_v15 = vadd.f32 %v1647_v14, %v1646_v12  ;;  %1816 = vmatprep.mubr.f32.mxu0 %v917_v13 }
 0x110   :  { %v1649_v16 = vpop.f32.mrf.mxu1 }
 0x111   :  { %v920_v17 = vmul.f32 %v1648_v15, %v1648_v15 }
 0x112   :  { %v1650_v18 = vpop.f32.mrf.mxu1 }
 0x113   :  { %v1651_v19 = vadd.f32 %v1650_v18, %v1649_v16  ;;  %1817 = vmatmul.mubr.f32.gmra.mxu0 %v920_v17 }
 0x114   :  { %v1652_v20 = vpop.f32.mrf.mxu1 }
 0x115   :  { %v923_v21 = vmul.f32 %v1651_v19, %v1651_v19 }
 0x116   :  { %v1653_v22 = vpop.f32.mrf.mxu1 }
 0x117   :  { %v1654_v23 = vadd.f32 %v1653_v22, %v1652_v20  ;;  %1819 = vmatprep.mubr.f32.mxu0 %v923_v21 }
 0x118   :  { %v1655_v25 = vpop.f32.mrf.mxu1 }
 0x119   :  { %v926_v26 = vmul.f32 %v1654_v23, %v1654_v23 }
 0x11a   :  { %v1656_v28 = vpop.f32.mrf.mxu1 }
 0x11b   :  { %v1657_v30 = vadd.f32 %v1656_v28, %v1655_v25  ;;  %1820 = vmatmul.mubr.f32.gmra.mxu0 %v926_v26 }
 0x11c   :  { %v1658_v33 = vpop.f32.mrf.mxu1 }
 0x11d   :  { %v589_v24 = vpop.f32.mrf.mxu0  ;;  %v929_v34 = vmul.f32 %v1657_v30, %v1657_v30 }
 0x11e   :  { %v909_v31 = vmul.f32 %v589_v24, %v589_v24  ;;  %v1659_v36 = vpop.f32.mrf.mxu1 }
 0x11f   :  { %v591_v27 = vpop.f32.mrf.mxu0  ;;  %v1660_v38 = vadd.f32 %v1659_v36, %v1658_v33  ;;  %1822 = vmatprep.mubr.f32.mxu0 %v929_v34 }
 0x120   :  { %v910_v29 = vmul.f32 %v591_v27, %v591_v27  ;;  %v1661_v41 = vpop.f32.mrf.mxu1 }
 0x121   :  { %v593_v32 = vpop.f32.mrf.mxu0  ;;  %v932_v43 = vmul.f32 %v1660_v38, %v1660_v38 }
 0x122   :  { %1117 = vmatprep.mubr.f32.mxu1 %v910_v29  ;;  %v912_v39 = vmul.f32 %v593_v32, %v593_v32  ;;  %v1662_v45 = vpop.f32.mrf.mxu1 }
 0x123   :  { %v595_v35 = vpop.f32.mrf.mxu0  ;;  %1118 = vmatmul.mubr.f32.vlgmr.msra.gmra.mxu1 %v909_v31  ;;  %v1663_v47 = vadd.f32 %v1662_v45, %v1661_v41  ;;  %1823 = vmatmul.mubr.f32.gmra.mxu0 %v932_v43 }
 0x124   :  { %v913_v37 = vmul.f32 %v595_v35, %v595_v35  ;;  %v1664_v50 = vpop.f32.mrf.mxu1 }
 0x125   :  { %v599_v40 = vpop.f32.mrf.mxu0  ;;  %v935_v51 = vmul.f32 %v1663_v47, %v1663_v47 }
 0x126   :  { %1122 = vmatprep.mubr.f32.mxu1 %v913_v37  ;;  %v915_v48 = vmul.f32 %v599_v40, %v599_v40  ;;  %v1665_v53 = vpop.f32.mrf.mxu1 }
 0x127   :  { %v601_v44 = vpop.f32.mrf.mxu0  ;;  %1123 = vmatmul.mubr.f32.gmra.mxu1 %v912_v39  ;;  %v1666_v55 = vadd.f32 %v1665_v53, %v1664_v50  ;;  %1825 = vmatprep.mubr.f32.mxu0 %v935_v51 }
 0x128   :  { %v916_v46 = vmul.f32 %v601_v44, %v601_v44  ;;  %v1667_v58 = vpop.f32.mrf.mxu1 }
 0x129   :  { %v603_v49 = vpop.f32.mrf.mxu0  ;;  %v938_v59 = vmul.f32 %v1666_v55, %v1666_v55 }
 0x12a   :  { %1127 = vmatprep.mubr.f32.mxu1 %v916_v46  ;;  %v918_v56 = vmul.f32 %v603_v49, %v603_v49  ;;  %v1668_v61 = vpop.f32.mrf.mxu1 }
 0x12b   :  { %v605_v52 = vpop.f32.mrf.mxu0  ;;  %1128 = vmatmul.mubr.f32.gmra.mxu1 %v915_v48  ;;  %v1669_v62 = vadd.f32 %v1668_v61, %v1667_v58  ;;  %1826 = vmatmul.mubr.f32.gmra.mxu0 %v938_v59 }
 0x12c   :  { %v919_v54 = vmul.f32 %v605_v52, %v605_v52  ;;  %v1670_v1 = vpop.f32.mrf.mxu1 }
 0x12d   :  { %v609_v57 = vpop.f32.mrf.mxu0  ;;  %v941_v2 = vmul.f32 %v1669_v62, %v1669_v62 }
 0x12e   :  { %1132 = vmatprep.mubr.f32.mxu1 %v919_v54  ;;  %v921_v63 = vmul.f32 %v609_v57, %v609_v57  ;;  %v1671_v4 = vpop.f32.mrf.mxu1 }
 0x12f   :  { %v611_v60 = vpop.f32.mrf.mxu0  ;;  %1133 = vmatmul.mubr.f32.gmra.mxu1 %v918_v56  ;;  %v1672_v6 = vadd.f32 %v1671_v4, %v1670_v1  ;;  %1828 = vmatprep.mubr.f32.mxu0 %v941_v2 }
 0x130   :  { %v922_v42 = vmul.f32 %v611_v60, %v611_v60  ;;  %v1673_v9 = vpop.f32.mrf.mxu1 }
 0x131   :  { %v613_v0 = vpop.f32.mrf.mxu0  ;;  %v944_v10 = vmul.f32 %v1672_v6, %v1672_v6 }
 0x132   :  { %1137 = vmatprep.mubr.f32.mxu1 %v922_v42  ;;  %v924_v7 = vmul.f32 %v613_v0, %v613_v0  ;;  %v1674_v12 = vpop.f32.mrf.mxu1 }
 0x133   :  { %v615_v3 = vpop.f32.mrf.mxu0  ;;  %1138 = vmatmul.mubr.f32.gmra.mxu1 %v921_v63  ;;  %v1675_v14 = vadd.f32 %v1674_v12, %v1673_v9  ;;  %1829 = vmatmul.mubr.f32.gmra.mxu0 %v944_v10 }
 0x134   :  { %v925_v5 = vmul.f32 %v615_v3, %v615_v3  ;;  %v1676_v17 = vpop.f32.mrf.mxu1 }
 0x135   :  { %v619_v8 = vpop.f32.mrf.mxu0  ;;  %v947_v18 = vmul.f32 %v1675_v14, %v1675_v14 }
 0x136   :  { %1142 = vmatprep.mubr.f32.mxu1 %v925_v5  ;;  %v927_v15 = vmul.f32 %v619_v8, %v619_v8  ;;  %v1677_v20 = vpop.f32.mrf.mxu1 }
 0x137   :  { %v621_v11 = vpop.f32.mrf.mxu0  ;;  %1143 = vmatmul.mubr.f32.gmra.mxu1 %v924_v7  ;;  %v1678_v22 = vadd.f32 %v1677_v20, %v1676_v17  ;;  %1831 = vmatprep.mubr.f32.mxu0 %v947_v18 }
 0x138   :  { %v928_v13 = vmul.f32 %v621_v11, %v621_v11  ;;  %v1679_v25 = vpop.f32.mrf.mxu1 }
 0x139   :  { %v623_v16 = vpop.f32.mrf.mxu0  ;;  %v950_v26 = vmul.f32 %v1678_v22, %v1678_v22 }
 0x13a   :  { %1147 = vmatprep.mubr.f32.mxu1 %v928_v13  ;;  %v930_v23 = vmul.f32 %v623_v16, %v623_v16  ;;  %v1680_v28 = vpop.f32.mrf.mxu1 }
 0x13b   :  { %v625_v19 = vpop.f32.mrf.mxu0  ;;  %1148 = vmatmul.mubr.f32.gmra.mxu1 %v927_v15  ;;  %v1681_v30 = vadd.f32 %v1680_v28, %v1679_v25  ;;  %1832 = vmatmul.mubr.f32.gmra.mxu0 %v950_v26 }
 0x13c   :  { %v931_v21 = vmul.f32 %v625_v19, %v625_v19  ;;  %v1682_v33 = vpop.f32.mrf.mxu1 }
 0x13d   :  { %v629_v24 = vpop.f32.mrf.mxu0  ;;  %v953_v34 = vmul.f32 %v1681_v30, %v1681_v30 }
 0x13e   :  { %1152 = vmatprep.mubr.f32.mxu1 %v931_v21  ;;  %v933_v31 = vmul.f32 %v629_v24, %v629_v24  ;;  %v1683_v36 = vpop.f32.mrf.mxu1 }
 0x13f   :  { %v631_v27 = vpop.f32.mrf.mxu0  ;;  %1153 = vmatmul.mubr.f32.gmra.mxu1 %v930_v23  ;;  %v1684_v38 = vadd.f32 %v1683_v36, %v1682_v33  ;;  %1834 = vmatprep.mubr.f32.mxu0 %v953_v34 }
 0x140   :  { %v934_v29 = vmul.f32 %v631_v27, %v631_v27  ;;  %v1685_v41 = vpop.f32.mrf.mxu1 }
 0x141   :  { %v633_v32 = vpop.f32.mrf.mxu0  ;;  %v956_v43 = vmul.f32 %v1684_v38, %v1684_v38 }
 0x142   :  { %1157 = vmatprep.mubr.f32.mxu1 %v934_v29  ;;  %v936_v39 = vmul.f32 %v633_v32, %v633_v32  ;;  %v1686_v45 = vpop.f32.mrf.mxu1 }
 0x143   :  { %v635_v35 = vpop.f32.mrf.mxu0  ;;  %1158 = vmatmul.mubr.f32.gmra.mxu1 %v933_v31  ;;  %v1687_v47 = vadd.f32 %v1686_v45, %v1685_v41  ;;  %1835 = vmatmul.mubr.f32.gmra.mxu0 %v956_v43 }
 0x144   :  { %v937_v37 = vmul.f32 %v635_v35, %v635_v35  ;;  %v1688_v50 = vpop.f32.mrf.mxu1 }
 0x145   :  { %v639_v40 = vpop.f32.mrf.mxu0  ;;  %v959_v51 = vmul.f32 %v1687_v47, %v1687_v47 }
 0x146   :  { %1162 = vmatprep.mubr.f32.mxu1 %v937_v37  ;;  %v939_v48 = vmul.f32 %v639_v40, %v639_v40  ;;  %v1689_v53 = vpop.f32.mrf.mxu1 }
 0x147   :  { %v641_v44 = vpop.f32.mrf.mxu0  ;;  %1163 = vmatmul.mubr.f32.gmra.mxu1 %v936_v39  ;;  %v1690_v55 = vadd.f32 %v1689_v53, %v1688_v50  ;;  %1837 = vmatprep.mubr.f32.mxu0 %v959_v51 }
 0x148   :  { %v940_v46 = vmul.f32 %v641_v44, %v641_v44  ;;  %v1691_v58 = vpop.f32.mrf.mxu1 }
 0x149   :  { %v643_v49 = vpop.f32.mrf.mxu0  ;;  %v962_v59 = vmul.f32 %v1690_v55, %v1690_v55 }
 0x14a   :  { %1167 = vmatprep.mubr.f32.mxu1 %v940_v46  ;;  %v942_v56 = vmul.f32 %v643_v49, %v643_v49  ;;  %v1692_v61 = vpop.f32.mrf.mxu1 }
 0x14b   :  { %v645_v52 = vpop.f32.mrf.mxu0  ;;  %1168 = vmatmul.mubr.f32.gmra.mxu1 %v939_v48  ;;  %v1693_v62 = vadd.f32 %v1692_v61, %v1691_v58  ;;  %1838 = vmatmul.mubr.f32.gmra.mxu0 %v962_v59 }
 0x14c   :  { %v943_v54 = vmul.f32 %v645_v52, %v645_v52  ;;  %v1694_v1 = vpop.f32.mrf.mxu1 }
 0x14d   :  { %v649_v57 = vpop.f32.mrf.mxu0  ;;  %v965_v2 = vmul.f32 %v1693_v62, %v1693_v62 }
 0x14e   :  { %1172 = vmatprep.mubr.f32.mxu1 %v943_v54  ;;  %v945_v63 = vmul.f32 %v649_v57, %v649_v57  ;;  %v1695_v4 = vpop.f32.mrf.mxu1 }
 0x14f   :  { %v651_v60 = vpop.f32.mrf.mxu0  ;;  %1173 = vmatmul.mubr.f32.gmra.mxu1 %v942_v56  ;;  %v1696_v6 = vadd.f32 %v1695_v4, %v1694_v1  ;;  %1840 = vmatprep.mubr.f32.mxu0 %v965_v2 }
 0x150   :  { %v946_v42 = vmul.f32 %v651_v60, %v651_v60  ;;  %v1697_v9 = vpop.f32.mrf.mxu1 }
 0x151   :  { %v653_v0 = vpop.f32.mrf.mxu0  ;;  %v968_v10 = vmul.f32 %v1696_v6, %v1696_v6 }
 0x152   :  { %1177 = vmatprep.mubr.f32.mxu1 %v946_v42  ;;  %v948_v7 = vmul.f32 %v653_v0, %v653_v0  ;;  %v1698_v12 = vpop.f32.mrf.mxu1 }
 0x153   :  { %v655_v3 = vpop.f32.mrf.mxu0  ;;  %1178 = vmatmul.mubr.f32.gmra.mxu1 %v945_v63  ;;  %v1699_v14 = vadd.f32 %v1698_v12, %v1697_v9  ;;  %1841 = vmatmul.mubr.f32.gmra.mxu0 %v968_v10 }
 0x154   :  { %v949_v5 = vmul.f32 %v655_v3, %v655_v3  ;;  %v1700_v17 = vpop.f32.mrf.mxu1 }
 0x155   :  { %v659_v8 = vpop.f32.mrf.mxu0  ;;  %v971_v18 = vmul.f32 %v1699_v14, %v1699_v14 }
 0x156   :  { %1182 = vmatprep.mubr.f32.mxu1 %v949_v5  ;;  %v951_v15 = vmul.f32 %v659_v8, %v659_v8  ;;  %v1701_v20 = vpop.f32.mrf.mxu1 }
 0x157   :  { %v661_v11 = vpop.f32.mrf.mxu0  ;;  %1183 = vmatmul.mubr.f32.gmra.mxu1 %v948_v7  ;;  %v1702_v22 = vadd.f32 %v1701_v20, %v1700_v17  ;;  %1843 = vmatprep.mubr.f32.mxu0 %v971_v18 }
 0x158   :  { %v952_v13 = vmul.f32 %v661_v11, %v661_v11  ;;  %v1703_v25 = vpop.f32.mrf.mxu1 }
 0x159   :  { %v663_v16 = vpop.f32.mrf.mxu0  ;;  %v974_v26 = vmul.f32 %v1702_v22, %v1702_v22 }
 0x15a   :  { %1187 = vmatprep.mubr.f32.mxu1 %v952_v13  ;;  %v954_v23 = vmul.f32 %v663_v16, %v663_v16  ;;  %v1704_v28 = vpop.f32.mrf.mxu1 }
 0x15b   :  { %v665_v19 = vpop.f32.mrf.mxu0  ;;  %1188 = vmatmul.mubr.f32.gmra.mxu1 %v951_v15  ;;  %v1705_v30 = vadd.f32 %v1704_v28, %v1703_v25  ;;  %1844 = vmatmul.mubr.f32.gmra.mxu0 %v974_v26 }
 0x15c   :  { %v955_v21 = vmul.f32 %v665_v19, %v665_v19  ;;  %v1706_v33 = vpop.f32.mrf.mxu1 }
 0x15d   :  { %v669_v24 = vpop.f32.mrf.mxu0  ;;  %v977_v34 = vmul.f32 %v1705_v30, %v1705_v30 }
 0x15e   :  { %1192 = vmatprep.mubr.f32.mxu1 %v955_v21  ;;  %v957_v31 = vmul.f32 %v669_v24, %v669_v24  ;;  %v1707_v36 = vpop.f32.mrf.mxu1 }
 0x15f   :  { %v671_v27 = vpop.f32.mrf.mxu0  ;;  %1193 = vmatmul.mubr.f32.gmra.mxu1 %v954_v23  ;;  %v1708_v38 = vadd.f32 %v1707_v36, %v1706_v33  ;;  %1846 = vmatprep.mubr.f32.mxu0 %v977_v34 }
 0x160   :  { %v958_v29 = vmul.f32 %v671_v27, %v671_v27  ;;  %v1709_v41 = vpop.f32.mrf.mxu1 }
 0x161   :  { %v673_v32 = vpop.f32.mrf.mxu0  ;;  %v980_v43 = vmul.f32 %v1708_v38, %v1708_v38 }
 0x162   :  { %1197 = vmatprep.mubr.f32.mxu1 %v958_v29  ;;  %v960_v39 = vmul.f32 %v673_v32, %v673_v32  ;;  %v1710_v45 = vpop.f32.mrf.mxu1 }
 0x163   :  { %v675_v35 = vpop.f32.mrf.mxu0  ;;  %1198 = vmatmul.mubr.f32.gmra.mxu1 %v957_v31  ;;  %v1711_v47 = vadd.f32 %v1710_v45, %v1709_v41  ;;  %1847 = vmatmul.mubr.f32.gmra.mxu0 %v980_v43 }
 0x164   :  { %v961_v37 = vmul.f32 %v675_v35, %v675_v35  ;;  %v1712_v50 = vpop.f32.mrf.mxu1 }
 0x165   :  { %v679_v40 = vpop.f32.mrf.mxu0  ;;  %v983_v51 = vmul.f32 %v1711_v47, %v1711_v47 }
 0x166   :  { %1202 = vmatprep.mubr.f32.mxu1 %v961_v37  ;;  %v963_v48 = vmul.f32 %v679_v40, %v679_v40  ;;  %v1713_v53 = vpop.f32.mrf.mxu1 }
 0x167   :  { %v681_v44 = vpop.f32.mrf.mxu0  ;;  %1203 = vmatmul.mubr.f32.gmra.mxu1 %v960_v39  ;;  %v1714_v55 = vadd.f32 %v1713_v53, %v1712_v50  ;;  %1849 = vmatprep.mubr.f32.mxu0 %v983_v51 }
 0x168   :  { %v964_v46 = vmul.f32 %v681_v44, %v681_v44  ;;  %v1715_v58 = vpop.f32.mrf.mxu1 }
 0x169   :  { %v683_v49 = vpop.f32.mrf.mxu0  ;;  %v986_v59 = vmul.f32 %v1714_v55, %v1714_v55 }
 0x16a   :  { %1207 = vmatprep.mubr.f32.mxu1 %v964_v46  ;;  %v966_v56 = vmul.f32 %v683_v49, %v683_v49  ;;  %v1716_v61 = vpop.f32.mrf.mxu1 }
 0x16b   :  { %v685_v52 = vpop.f32.mrf.mxu0  ;;  %1208 = vmatmul.mubr.f32.gmra.mxu1 %v963_v48  ;;  %v1717_v62 = vadd.f32 %v1716_v61, %v1715_v58  ;;  %1850 = vmatmul.mubr.f32.gmra.mxu0 %v986_v59 }
 0x16c   :  { %v967_v54 = vmul.f32 %v685_v52, %v685_v52  ;;  %v1718_v1 = vpop.f32.mrf.mxu1 }
 0x16d   :  { %v689_v57 = vpop.f32.mrf.mxu0  ;;  %v989_v2 = vmul.f32 %v1717_v62, %v1717_v62 }
 0x16e   :  { %1212 = vmatprep.mubr.f32.mxu1 %v967_v54  ;;  %v969_v63 = vmul.f32 %v689_v57, %v689_v57  ;;  %v1719_v4 = vpop.f32.mrf.mxu1 }
 0x16f   :  { %v691_v60 = vpop.f32.mrf.mxu0  ;;  %1213 = vmatmul.mubr.f32.gmra.mxu1 %v966_v56  ;;  %v1720_v6 = vadd.f32 %v1719_v4, %v1718_v1  ;;  %1852 = vmatprep.mubr.f32.mxu0 %v989_v2 }
 0x170   :  { %v970_v42 = vmul.f32 %v691_v60, %v691_v60  ;;  %v1721_v9 = vpop.f32.mrf.mxu1 }
 0x171   :  { %v693_v0 = vpop.f32.mrf.mxu0  ;;  %v992_v10 = vmul.f32 %v1720_v6, %v1720_v6 }
 0x172   :  { %1217 = vmatprep.mubr.f32.mxu1 %v970_v42  ;;  %v972_v7 = vmul.f32 %v693_v0, %v693_v0  ;;  %v1722_v12 = vpop.f32.mrf.mxu1 }
 0x173   :  { %v695_v3 = vpop.f32.mrf.mxu0  ;;  %1218 = vmatmul.mubr.f32.gmra.mxu1 %v969_v63  ;;  %v1723_v14 = vadd.f32 %v1722_v12, %v1721_v9  ;;  %1853 = vmatmul.mubr.f32.gmra.mxu0 %v992_v10 }
 0x174   :  { %v973_v5 = vmul.f32 %v695_v3, %v695_v3  ;;  %v1724_v17 = vpop.f32.mrf.mxu1 }
 0x175   :  { %v699_v8 = vpop.f32.mrf.mxu0  ;;  %v995_v18 = vmul.f32 %v1723_v14, %v1723_v14 }
 0x176   :  { %1222 = vmatprep.mubr.f32.mxu1 %v973_v5  ;;  %v975_v15 = vmul.f32 %v699_v8, %v699_v8  ;;  %v1725_v20 = vpop.f32.mrf.mxu1 }
 0x177   :  { %v701_v11 = vpop.f32.mrf.mxu0  ;;  %1223 = vmatmul.mubr.f32.gmra.mxu1 %v972_v7  ;;  %v1726_v22 = vadd.f32 %v1725_v20, %v1724_v17  ;;  %1855 = vmatprep.mubr.f32.mxu0 %v995_v18 }
 0x178   :  { %v976_v13 = vmul.f32 %v701_v11, %v701_v11  ;;  %v1727_v25 = vpop.f32.mrf.mxu1 }
 0x179   :  { %v703_v16 = vpop.f32.mrf.mxu0  ;;  %v998_v26 = vmul.f32 %v1726_v22, %v1726_v22 }
 0x17a   :  { %1227 = vmatprep.mubr.f32.mxu1 %v976_v13  ;;  %v978_v23 = vmul.f32 %v703_v16, %v703_v16  ;;  %v1728_v28 = vpop.f32.mrf.mxu1 }
 0x17b   :  { %v705_v19 = vpop.f32.mrf.mxu0  ;;  %1228 = vmatmul.mubr.f32.gmra.mxu1 %v975_v15  ;;  %v1729_v30 = vadd.f32 %v1728_v28, %v1727_v25  ;;  %1856 = vmatmul.mubr.f32.gmra.mxu0 %v998_v26 }
 0x17c   :  { %v979_v21 = vmul.f32 %v705_v19, %v705_v19  ;;  %v1730_v33 = vpop.f32.mrf.mxu1 }
 0x17d   :  { %v709_v24 = vpop.f32.mrf.mxu0  ;;  %v1001_v34 = vmul.f32 %v1729_v30, %v1729_v30 }
 0x17e   :  { %1232 = vmatprep.mubr.f32.mxu1 %v979_v21  ;;  %v981_v31 = vmul.f32 %v709_v24, %v709_v24  ;;  %v1731_v36 = vpop.f32.mrf.mxu1 }
 0x17f   :  { %v711_v27 = vpop.f32.mrf.mxu0  ;;  %1233 = vmatmul.mubr.f32.gmra.mxu1 %v978_v23  ;;  %v1732_v38 = vadd.f32 %v1731_v36, %v1730_v33  ;;  %1858 = vmatprep.mubr.f32.mxu0 %v1001_v34 }
 0x180   :  { %v982_v29 = vmul.f32 %v711_v27, %v711_v27 }
 0x181   :  { %v713_v32 = vpop.f32.mrf.mxu0  ;;  %v1004_v41 = vmul.f32 %v1732_v38, %v1732_v38 }
 0x182   :  { %1237 = vmatprep.mubr.f32.mxu1 %v982_v29  ;;  %v984_v39 = vmul.f32 %v713_v32, %v713_v32 }
 0x183   :  { %v715_v35 = vpop.f32.mrf.mxu0  ;;  %1238 = vmatmul.mubr.f32.gmra.mxu1 %v981_v31  ;;  %1859 = vmatmul.mubr.f32.gmra.mxu0 %v1004_v41 }
 0x184   :  { %v985_v37 = vmul.f32 %v715_v35, %v715_v35 }
 0x185   :  { %v719_v40 = vpop.f32.mrf.mxu0 }
 0x186   :  { %1242 = vmatprep.mubr.f32.mxu1 %v985_v37  ;;  %v987_v45 = vmul.f32 %v719_v40, %v719_v40 }
 0x187   :  { %v721_v43 = vpop.f32.mrf.mxu0  ;;  %1243 = vmatmul.mubr.f32.gmra.mxu1 %v984_v39 }
 0x188   :  { %v988_v44 = vmul.f32 %v721_v43, %v721_v43 }
 0x189   :  { %v723_v46 = vpop.f32.mrf.mxu0 }
 0x18a   :  { %1247 = vmatprep.mubr.f32.mxu1 %v988_v44  ;;  %v990_v49 = vmul.f32 %v723_v46, %v723_v46 }
 0x18b   :  { %v725_v47 = vpop.f32.mrf.mxu0  ;;  %1248 = vmatmul.mubr.f32.gmra.mxu1 %v987_v45 }
 0x18c   :  { %v991_v48 = vmul.f32 %v725_v47, %v725_v47 }
 0x18d   :  { %v729_v50 = vpop.f32.mrf.mxu0 }
 0x18e   :  { %1252 = vmatprep.mubr.f32.mxu1 %v991_v48  ;;  %v993_v53 = vmul.f32 %v729_v50, %v729_v50 }
 0x18f   :  { %v731_v51 = vpop.f32.mrf.mxu0  ;;  %1253 = vmatmul.mubr.f32.gmra.mxu1 %v990_v49 }
 0x190   :  { %v994_v52 = vmul.f32 %v731_v51, %v731_v51 }
 0x191   :  { %v733_v54 = vpop.f32.mrf.mxu0 }
 0x192   :  { %1257 = vmatprep.mubr.f32.mxu1 %v994_v52  ;;  %v996_v57 = vmul.f32 %v733_v54, %v733_v54 }
 0x193   :  { %v735_v55 = vpop.f32.mrf.mxu0  ;;  %1258 = vmatmul.mubr.f32.gmra.mxu1 %v993_v53 }
 0x194   :  { %v997_v56 = vmul.f32 %v735_v55, %v735_v55 }
 0x195   :  { %v739_v58 = vpop.f32.mrf.mxu0 }
 0x196   :  { %1262 = vmatprep.mubr.f32.mxu1 %v997_v56  ;;  %v999_v61 = vmul.f32 %v739_v58, %v739_v58 }
 0x197   :  { %v741_v59 = vpop.f32.mrf.mxu0  ;;  %1263 = vmatmul.mubr.f32.gmra.mxu1 %v996_v57 }
 0x198   :  { %v1000_v60 = vmul.f32 %v741_v59, %v741_v59 }
 0x199   :  { %v743_v42 = vpop.f32.mrf.mxu0 }
 0x19a   :  { %1267 = vmatprep.mubr.f32.mxu1 %v1000_v60  ;;  %v1002_v0 = vmul.f32 %v743_v42, %v743_v42 }
 0x19b   :  { %v745_v62 = vpop.f32.mrf.mxu0  ;;  %1268 = vmatmul.mubr.f32.gmra.mxu1 %v999_v61 }
 0x19c   :  { %v1003_v63 = vmul.f32 %v745_v62, %v745_v62 }
 0x19e   :  { %1272 = vmatprep.mubr.f32.mxu1 %v1003_v63 }
 0x19f   :  { %1273 = vmatmul.mubr.f32.gmra.mxu1 %v1002_v0 }
 0x1cb   :  { %v1815_v1 = vpop.f32.mrf.mxu0 }
 0x1cd   :  { %v1344_v2 = vpop.f32.mrf.mxu0 }
 0x1d3   :  { %v1818_v6 = vpop.f32.mrf.mxu0 }
 0x1d5   :  { %v1354_v10 = vpop.f32.mrf.mxu0 }
 0x1db   :  { %v1821_v14 = vpop.f32.mrf.mxu0 }
 0x1dd   :  { %v1364_v18 = vpop.f32.mrf.mxu0 }
 0x1e3   :  { %v1119_v3 = vpop.f32.mrf.mxu1  ;;  %v1824_v22 = vpop.f32.mrf.mxu0 }
 0x1e4   :  { %v1345_v4 = vadd.f32 %v1344_v2, %v1119_v3 }
 0x1e5   :  { %v1121_v5 = vpop.f32.mrf.mxu1  ;;  %v1374_v26 = vpop.f32.mrf.mxu0 }
 0x1e6   :  { %1503 = vst [vmem:[%s2348_s3] sm:$0xff] %v1345_v4 }
 0x1e7   :  { %v1124_v7 = vpop.f32.mrf.mxu1 }
 0x1e8   :  { %v1350_v8 = vadd.f32 %v1815_v1, %v1124_v7 }
 0x1e9   :  { %v1126_v9 = vpop.f32.mrf.mxu1 }
 0x1ea   :  { %1504 = vst [vmem:[%s2348_s3 + $0x8] sm:$0xff] %v1350_v8 }
 0x1eb   :  { %v1129_v11 = vpop.f32.mrf.mxu1  ;;  %v1827_v30 = vpop.f32.mrf.mxu0 }
 0x1ec   :  { %v1355_v12 = vadd.f32 %v1354_v10, %v1129_v11 }
 0x1ed   :  { %v1131_v13 = vpop.f32.mrf.mxu1  ;;  %v1384_v34 = vpop.f32.mrf.mxu0 }
 0x1ee   :  { %1505 = vst [vmem:[%s2348_s3 + $0x10] sm:$0xff] %v1355_v12 }
 0x1ef   :  { %v1134_v15 = vpop.f32.mrf.mxu1 }
 0x1f0   :  { %v1360_v16 = vadd.f32 %v1818_v6, %v1134_v15 }
 0x1f1   :  { %v1136_v17 = vpop.f32.mrf.mxu1 }
 0x1f2   :  { %1506 = vst [vmem:[%s2348_s3 + $0x18] sm:$0xff] %v1360_v16 }
 0x1f3   :  { %v1139_v19 = vpop.f32.mrf.mxu1  ;;  %v1830_v38 = vpop.f32.mrf.mxu0 }
 0x1f4   :  { %v1365_v20 = vadd.f32 %v1364_v18, %v1139_v19 }
 0x1f5   :  { %v1141_v21 = vpop.f32.mrf.mxu1  ;;  %v1394_v43 = vpop.f32.mrf.mxu0 }
 0x1f6   :  { %1507 = vst [vmem:[%s2348_s3 + $0x20] sm:$0xff] %v1365_v20 }
 0x1f7   :  { %v1144_v23 = vpop.f32.mrf.mxu1 }
 0x1f8   :  { %v1370_v24 = vadd.f32 %v1821_v14, %v1144_v23 }
 0x1f9   :  { %v1146_v25 = vpop.f32.mrf.mxu1 }
 0x1fa   :  { %1508 = vst [vmem:[%s2348_s3 + $0x28] sm:$0xff] %v1370_v24 }
 0x1fb   :  { %v1149_v27 = vpop.f32.mrf.mxu1  ;;  %v1833_v47 = vpop.f32.mrf.mxu0 }
 0x1fc   :  { %v1375_v28 = vadd.f32 %v1374_v26, %v1149_v27 }
 0x1fd   :  { %v1151_v29 = vpop.f32.mrf.mxu1  ;;  %v1404_v51 = vpop.f32.mrf.mxu0 }
 0x1fe   :  { %1509 = vst [vmem:[%s2348_s3 + $0x30] sm:$0xff] %v1375_v28 }
 0x1ff   :  { %v1154_v31 = vpop.f32.mrf.mxu1 }
 0x200   :  { %v1380_v32 = vadd.f32 %v1824_v22, %v1154_v31 }
 0x201   :  { %v1156_v33 = vpop.f32.mrf.mxu1 }
 0x202   :  { %1510 = vst [vmem:[%s2348_s3 + $0x38] sm:$0xff] %v1380_v32 }
 0x203   :  { %v1159_v35 = vpop.f32.mrf.mxu1  ;;  %v1836_v55 = vpop.f32.mrf.mxu0 }
 0x204   :  { %v1385_v36 = vadd.f32 %v1384_v34, %v1159_v35 }
 0x205   :  { %v1161_v37 = vpop.f32.mrf.mxu1  ;;  %v1414_v59 = vpop.f32.mrf.mxu0 }
 0x206   :  { %1511 = vst [vmem:[%s2348_s3 + $0x40] sm:$0xff] %v1385_v36 }
 0x207   :  { %v1164_v39 = vpop.f32.mrf.mxu1 }
 0x208   :  { %v1390_v40 = vadd.f32 %v1827_v30, %v1164_v39 }
 0x209   :  { %v1166_v41 = vpop.f32.mrf.mxu1 }
 0x20a   :  { %1512 = vst [vmem:[%s2348_s3 + $0x48] sm:$0xff] %v1390_v40 }
 0x20b   :  { %v1169_v44 = vpop.f32.mrf.mxu1  ;;  %v1839_v62 = vpop.f32.mrf.mxu0 }
 0x20c   :  { %v1395_v45 = vadd.f32 %v1394_v43, %v1169_v44 }
 0x20d   :  { %v1171_v46 = vpop.f32.mrf.mxu1  ;;  %v1424_v2 = vpop.f32.mrf.mxu0 }
 0x20e   :  { %1513 = vst [vmem:[%s2348_s3 + $0x50] sm:$0xff] %v1395_v45 }
 0x20f   :  { %v1174_v48 = vpop.f32.mrf.mxu1 }
 0x210   :  { %v1400_v49 = vadd.f32 %v1830_v38, %v1174_v48 }
 0x211   :  { %v1176_v50 = vpop.f32.mrf.mxu1 }
 0x212   :  { %1514 = vst [vmem:[%s2348_s3 + $0x58] sm:$0xff] %v1400_v49 }
 0x213   :  { %v1179_v52 = vpop.f32.mrf.mxu1  ;;  %v1842_v6 = vpop.f32.mrf.mxu0 }
 0x214   :  { %v1405_v53 = vadd.f32 %v1404_v51, %v1179_v52 }
 0x215   :  { %v1181_v54 = vpop.f32.mrf.mxu1  ;;  %v1434_v10 = vpop.f32.mrf.mxu0 }
 0x216   :  { %1515 = vst [vmem:[%s2348_s3 + $0x60] sm:$0xff] %v1405_v53 }
 0x217   :  { %v1184_v56 = vpop.f32.mrf.mxu1 }
 0x218   :  { %v1410_v57 = vadd.f32 %v1833_v47, %v1184_v56 }
 0x219   :  { %v1186_v58 = vpop.f32.mrf.mxu1 }
 0x21a   :  { %1516 = vst [vmem:[%s2348_s3 + $0x68] sm:$0xff] %v1410_v57 }
 0x21b   :  { %v1189_v60 = vpop.f32.mrf.mxu1  ;;  %v1845_v14 = vpop.f32.mrf.mxu0 }
 0x21c   :  { %v1415_v61 = vadd.f32 %v1414_v59, %v1189_v60 }
 0x21d   :  { %v1191_v42 = vpop.f32.mrf.mxu1  ;;  %v1444_v18 = vpop.f32.mrf.mxu0 }
 0x21e   :  { %1517 = vst [vmem:[%s2348_s3 + $0x70] sm:$0xff] %v1415_v61 }
 0x21f   :  { %v1194_v63 = vpop.f32.mrf.mxu1 }
 0x220   :  { %v1420_v0 = vadd.f32 %v1836_v55, %v1194_v63 }
 0x221   :  { %v1196_v1 = vpop.f32.mrf.mxu1 }
 0x222   :  { %1518 = vst [vmem:[%s2348_s3 + $0x78] sm:$0xff] %v1420_v0 }
 0x223   :  { %v1199_v3 = vpop.f32.mrf.mxu1  ;;  %v1848_v22 = vpop.f32.mrf.mxu0 }
 0x224   :  { %v1425_v4 = vadd.f32 %v1424_v2, %v1199_v3 }
 0x225   :  { %v1201_v5 = vpop.f32.mrf.mxu1  ;;  %v1454_v26 = vpop.f32.mrf.mxu0 }
 0x226   :  { %1519 = vst [vmem:[%s2348_s3 + $0x80] sm:$0xff] %v1425_v4 }
 0x227   :  { %v1204_v7 = vpop.f32.mrf.mxu1 }
 0x228   :  { %v1430_v8 = vadd.f32 %v1839_v62, %v1204_v7 }
 0x229   :  { %v1206_v9 = vpop.f32.mrf.mxu1 }
 0x22a   :  { %1520 = vst [vmem:[%s2348_s3 + $0x88] sm:$0xff] %v1430_v8 }
 0x22b   :  { %v1209_v11 = vpop.f32.mrf.mxu1  ;;  %v1851_v30 = vpop.f32.mrf.mxu0 }
 0x22c   :  { %v1435_v12 = vadd.f32 %v1434_v10, %v1209_v11 }
 0x22d   :  { %v1211_v13 = vpop.f32.mrf.mxu1  ;;  %v1464_v34 = vpop.f32.mrf.mxu0 }
 0x22e   :  { %1521 = vst [vmem:[%s2348_s3 + $0x90] sm:$0xff] %v1435_v12 }
 0x22f   :  { %v1214_v15 = vpop.f32.mrf.mxu1 }
 0x230   :  { %v1440_v16 = vadd.f32 %v1842_v6, %v1214_v15 }
 0x231   :  { %v1216_v17 = vpop.f32.mrf.mxu1 }
 0x232   :  { %1522 = vst [vmem:[%s2348_s3 + $0x98] sm:$0xff] %v1440_v16 }
 0x233   :  { %v1219_v19 = vpop.f32.mrf.mxu1  ;;  %v1854_v38 = vpop.f32.mrf.mxu0 }
 0x234   :  { %v1445_v20 = vadd.f32 %v1444_v18, %v1219_v19 }
 0x235   :  { %v1221_v21 = vpop.f32.mrf.mxu1  ;;  %v1474_v43 = vpop.f32.mrf.mxu0 }
 0x236   :  { %1523 = vst [vmem:[%s2348_s3 + $0xa0] sm:$0xff] %v1445_v20 }
 0x237   :  { %v1224_v23 = vpop.f32.mrf.mxu1 }
 0x238   :  { %v1450_v24 = vadd.f32 %v1845_v14, %v1224_v23 }
 0x239   :  { %v1226_v25 = vpop.f32.mrf.mxu1 }
 0x23a   :  { %1524 = vst [vmem:[%s2348_s3 + $0xa8] sm:$0xff] %v1450_v24 }
 0x23b   :  { %v1229_v27 = vpop.f32.mrf.mxu1  ;;  %v1857_v47 = vpop.f32.mrf.mxu0 }
 0x23c   :  { %v1455_v28 = vadd.f32 %v1454_v26, %v1229_v27 }
 0x23d   :  { %v1231_v29 = vpop.f32.mrf.mxu1  ;;  %v1484_v51 = vpop.f32.mrf.mxu0 }
 0x23e   :  { %1525 = vst [vmem:[%s2348_s3 + $0xb0] sm:$0xff] %v1455_v28 }
 0x23f   :  { %v1234_v31 = vpop.f32.mrf.mxu1 }
 0x240   :  { %v1460_v32 = vadd.f32 %v1848_v22, %v1234_v31 }
 0x241   :  { %v1236_v33 = vpop.f32.mrf.mxu1 }
 0x242   :  { %1526 = vst [vmem:[%s2348_s3 + $0xb8] sm:$0xff] %v1460_v32 }
 0x243   :  { %v1239_v35 = vpop.f32.mrf.mxu1  ;;  %v1860_v55 = vpop.f32.mrf.mxu0 }
 0x244   :  { %v1465_v36 = vadd.f32 %v1464_v34, %v1239_v35 }
 0x245   :  { %v1241_v37 = vpop.f32.mrf.mxu1  ;;  %v1494_v59 = vpop.f32.mrf.mxu0 }
 0x246   :  { %1527 = vst [vmem:[%s2348_s3 + $0xc0] sm:$0xff] %v1465_v36 }
 0x247   :  { %v1244_v39 = vpop.f32.mrf.mxu1 }
 0x248   :  { %v1470_v40 = vadd.f32 %v1851_v30, %v1244_v39 }
 0x249   :  { %v1246_v41 = vpop.f32.mrf.mxu1 }
 0x24a   :  { %1528 = vst [vmem:[%s2348_s3 + $0xc8] sm:$0xff] %v1470_v40 }
 0x24b   :  { %v1249_v44 = vpop.f32.mrf.mxu1 }
 0x24c   :  { %v1475_v45 = vadd.f32 %v1474_v43, %v1249_v44 }
 0x24d   :  { %v1251_v46 = vpop.f32.mrf.mxu1 }
 0x24e   :  { %1529 = vst [vmem:[%s2348_s3 + $0xd0] sm:$0xff] %v1475_v45 }
 0x24f   :  { %v1254_v48 = vpop.f32.mrf.mxu1 }
 0x250   :  { %v1480_v49 = vadd.f32 %v1854_v38, %v1254_v48 }
 0x251   :  { %v1256_v50 = vpop.f32.mrf.mxu1 }
 0x252   :  { %1530 = vst [vmem:[%s2348_s3 + $0xd8] sm:$0xff] %v1480_v49 }
 0x253   :  { %v1259_v52 = vpop.f32.mrf.mxu1 }
 0x254   :  { %v1485_v53 = vadd.f32 %v1484_v51, %v1259_v52 }
 0x255   :  { %v1261_v54 = vpop.f32.mrf.mxu1 }
 0x256   :  { %1531 = vst [vmem:[%s2348_s3 + $0xe0] sm:$0xff] %v1485_v53 }
 0x257   :  { %v1264_v56 = vpop.f32.mrf.mxu1 }
 0x258   :  { %v1490_v57 = vadd.f32 %v1857_v47, %v1264_v56 }
 0x259   :  { %v1266_v58 = vpop.f32.mrf.mxu1 }
 0x25a   :  { %1532 = vst [vmem:[%s2348_s3 + $0xe8] sm:$0xff] %v1490_v57 }
 0x25b   :  { %v1269_v60 = vpop.f32.mrf.mxu1 }
 0x25c   :  { %v1495_v61 = vadd.f32 %v1494_v59, %v1269_v60 }
 0x25d   :  { %v1271_v42 = vpop.f32.mrf.mxu1 }
 0x25e   :  { %1533 = vst [vmem:[%s2348_s3 + $0xf0] sm:$0xff] %v1495_v61 }
 0x25f   :  { %v1274_v62 = vpop.f32.mrf.mxu1 }
 0x260   :  { %v1500_v63 = vadd.f32 %v1860_v55, %v1274_v62 }
 0x261   :  { %v1276_v0 = vpop.f32.mrf.mxu1 }
 0x262   :  { %1534 = vst [vmem:[%s2348_s3 + $0xf8] sm:$0xff] %v1500_v63 }
 0x263   :  { %1539 = vsyncpa [#allocation3], 1 }
 0x264   :  { %1540 = vsyncpa [#allocation5], 1 }

</bundles_post_ra>
